<compile_context>
chip_gen: v7x
topology: tpu7x:2x2x1
jax: 0.10.0
libtpu: 0.0.40
codegen_flags: <defaults>
</compile_context>

<pallas_src>
import jax
import jax.numpy as jnp
from jax import lax
from jax.experimental import pallas as pl
from jax.experimental.pallas import tpu as pltpu


def _round_up(x, m):
    return (x + m - 1) // m * m


def _gemm_bn_kernel(a_ref, w_ref, scale_ref, bias_ref, o_ref):
    # bf16 x bf16 -> f32 on the MXU; eval-mode BN as a per-output-channel f32 epilogue on the VPU.
    y = jnp.dot(a_ref[...], w_ref[...], preferred_element_type=jnp.float32)
    o_ref[...] = (y * scale_ref[...] + bias_ref[...]).astype(o_ref.dtype)


def patch_merging_forward(x, conv_w, bn_gamma, bn_beta, bn_mean, bn_var,
                          patch_size2, patch_stride2, eps=1e-5,
                          out_dtype=jnp.float32, channels_last=False):
    """x: (B, C, H, W) f32 NCHW.  conv_w: (2C, C, k, k).
    Returns (B, 2C, Ho, Wo) NCHW by default (matches the PyTorch module);
    channels_last=True returns (B, Ho, Wo, 2C) and skips the final transpose."""
    B, C, H, W = x.shape
    O = conv_w.shape[0]
    k, s = patch_size2, patch_stride2
    # TODO(synk): only the non-overlapping case (kernel == stride, no padding) is handled here.
    assert k == s and H % s == 0 and W % s == 0
    Ho, Wo = H // s, W // s
    M, K = B * Ho * Wo, C * k * k

    # ---- glue: bf16 im2col (cast first so transpose + downcast fuse into one pass over x) ----
    # (B, C, Ho, k, Wo, k) -> (B, Ho, Wo, C, k, k) -> (M, K); K flattened in (c, kh, kw) order.
    x_bf = x.astype(jnp.bfloat16)
    patches = (x_bf.reshape(B, C, Ho, k, Wo, k)
                   .transpose(0, 2, 4, 1, 3, 5)
                   .reshape(M, K))
    w_mat = conv_w.astype(jnp.bfloat16).reshape(O, K).T  # (K, O), same (c, kh, kw) flatten order

    # eval-mode BatchNorm folded into per-output-channel f32 scale/bias (applied in-kernel).
    inv_std = 1.0 / jnp.sqrt(bn_var.astype(jnp.float32) + eps)
    scale = (bn_gamma.astype(jnp.float32) * inv_std)
    bias = (bn_beta.astype(jnp.float32) - bn_mean.astype(jnp.float32) * scale)

    # ---- padding: lane-dense N; K padded only when the overhead is small (<= ~12.5%) ----
    N_pad = _round_up(O, 128)
    K_pad = _round_up(K, 128)
    if K_pad != K and (K_pad - K) * 8 > K:
        K_pad = K  # remainder too large relative to K; keep the full-dim (unpadded) block instead

    a = patches
    w = w_mat
    if K_pad != K:
        a = jnp.pad(a, ((0, 0), (0, K_pad - K)))
        w = jnp.pad(w, ((0, K_pad - K), (0, 0)))
    if N_pad != O:
        w = jnp.pad(w, ((0, 0), (0, N_pad - O)))
        scale = jnp.pad(scale, (0, N_pad - O))
        bias = jnp.pad(bias, (0, N_pad - O))
    scale2d = scale.reshape(1, N_pad)
    bias2d = bias.reshape(1, N_pad)

    # ---- generation-aware tile + VMEM budget ----
    out_bytes = jnp.dtype(out_dtype).itemsize
    try:
        vmem_cap = int(pltpu.get_tpu_info().vmem_capacity_bytes)
    except Exception:
        vmem_cap = 64 * 1024 * 1024  # conservative (v7x-sized) fallback
    budget = min(3 * vmem_cap // 4, 100 * 1024 * 1024)  # ~48 MiB on v7x, ~96 MiB on v5e/v6e

    def _vmem_need(t):
        return (2 * t * K_pad * 2            # A tiles (bf16, double-buffered)
                + 2 * t * N_pad * out_bytes  # out tiles (double-buffered)
                + 2 * K_pad * N_pad * 2      # W (budget 2 bufs in case single-buffering is off)
                + 4 * N_pad * 4)             # scale + bias

    tm = 128
    for cand in (2048, 1024, 512, 256, 128):
        if _vmem_need(cand) + (2 << 20) <= budget:
            tm = cand
            break
    # v7x has 2 TensorCores: keep >=2 parallel grid steps whenever M allows it.
    while tm > 128 and pl.cdiv(M, tm) < 2:
        tm //= 2
    grid = (pl.cdiv(M, tm),)

    vmem_limit = int(min(budget, max(_vmem_need(tm) + 16 * 1024 * 1024, 32 * 1024 * 1024)))

    cost = pl.CostEstimate(
        flops=2 * M * K_pad * N_pad,
        transcendentals=0,
        bytes_accessed=(M * K_pad * 2 + K_pad * N_pad * 2 + 2 * N_pad * 4
                        + M * N_pad * out_bytes),
    )

    def _build(single_buffer_invariants):
        const_kwargs = {"pipeline_mode": pl.Buffered(1)} if single_buffer_invariants else {}
        return pl.pallas_call(
            _gemm_bn_kernel,
            out_shape=jax.ShapeDtypeStruct((M, N_pad), out_dtype),
            grid=grid,
            in_specs=[
                pl.BlockSpec((tm, K_pad), lambda i: (i, 0)),
                pl.BlockSpec((K_pad, N_pad), lambda i: (0, 0), **const_kwargs),
                pl.BlockSpec((1, N_pad), lambda i: (0, 0), **const_kwargs),
                pl.BlockSpec((1, N_pad), lambda i: (0, 0), **const_kwargs),
            ],
            out_specs=pl.BlockSpec((tm, N_pad), lambda i: (i, 0)),
            compiler_params=pltpu.CompilerParams(
                dimension_semantics=("parallel",),
                vmem_limit_bytes=vmem_limit,
            ),
            cost_estimate=cost,
        )

    # Grid-invariant operands single-buffered when this jax build supports pl.Buffered(1);
    # otherwise fall back to the default (double-buffered) pipeline. Called eagerly, so a
    # lowering rejection is catchable here.
    try:
        out = _build(True)(a, w, scale2d, bias2d)
    except Exception:
        out = _build(False)(a, w, scale2d, bias2d)

    out = out[:, :O].reshape(B, Ho, Wo, O)
    if channels_last:
        # TODO(synk): prefer this path when the downstream consumer accepts NHWC (saves a full
        # HBM read+write of the output).
        return out
    return out.transpose(0, 3, 1, 2)


def reference_forward(x, conv_w, bn_gamma, bn_beta, bn_mean, bn_var, stride, eps=1e-5):
    y = lax.conv_general_dilated(
        x, conv_w, window_strides=(stride, stride), padding="VALID",
        dimension_numbers=("NCHW", "OIHW", "NCHW"))
    inv_std = 1.0 / jnp.sqrt(bn_var + eps)
    scale = (bn_gamma * inv_std)[None, :, None, None]
    bias = (bn_beta - bn_mean * bn_gamma * inv_std)[None, :, None, None]
    return y * scale + bias


if __name__ == "__main__":
    B, dim, H, W = 2, 4, 16, 16
    patch_size2, patch_stride2 = 2, 2
    out_dim = 2 * dim

    key = jax.random.PRNGKey(0)
    kx, kw, kg, kb, km, kv = jax.random.split(key, 6)

    x = jax.random.normal(kx, (B, dim, H, W), dtype=jnp.float32)
    conv_w = jax.random.normal(kw, (out_dim, dim, patch_size2, patch_size2), dtype=jnp.float32) * 0.1
    bn_gamma = jax.random.normal(kg, (out_dim,), dtype=jnp.float32) * 0.1 + 1.0
    bn_beta = jax.random.normal(kb, (out_dim,), dtype=jnp.float32) * 0.1
    bn_mean = jax.random.normal(km, (out_dim,), dtype=jnp.float32) * 0.1
    bn_var = jax.random.uniform(kv, (out_dim,), dtype=jnp.float32, minval=0.5, maxval=1.5)

    out = patch_merging_forward(x, conv_w, bn_gamma, bn_beta, bn_mean, bn_var,
                                patch_size2, patch_stride2)
    out = jax.block_until_ready(out)

    ref = reference_forward(x, conv_w, bn_gamma, bn_beta, bn_mean, bn_var, patch_stride2)
    assert out.shape == (B, out_dim, H // patch_stride2, W // patch_stride2)
    # bf16 GEMM operands with f32 accumulation -> loosened tolerance vs. the pure-f32 reference conv.
    assert jnp.allclose(out, ref, atol=5e-2, rtol=5e-2)

    print("KERNEL_OK")
</pallas_src>

<mosaic_0001>
module attributes {stable_mosaic.version = 11 : i64} {
  func.func @_gemm_bn_kernel(%arg0: i32, %arg1: memref<128x16xbf16, #tpu.memory_space<vmem>>, %arg2: memref<16x128xbf16, #tpu.memory_space<vmem>>, %arg3: memref<1x128xf32, #tpu.memory_space<vmem>>, %arg4: memref<1x128xf32, #tpu.memory_space<vmem>>, %arg5: memref<128x128xf32, #tpu.memory_space<vmem>>) attributes {dimension_semantics = [#tpu.dimension_semantics<parallel>], iteration_bounds = array<i64: 1>, scalar_prefetch = 0 : i64, scratch_operands = 0 : i64, tpu.core_type = #tpu.core_type<tc>, window_params = [{transform_indices = @transform_0, window_bounds = array<i64: 128, 16>}, {pipeline_mode = #tpu.pipeline_mode<synchronous>, transform_indices = @transform_1, window_bounds = array<i64: 16, 128>}, {pipeline_mode = #tpu.pipeline_mode<synchronous>, transform_indices = @transform_2, window_bounds = array<i64: 1, 128>}, {pipeline_mode = #tpu.pipeline_mode<synchronous>, transform_indices = @transform_3, window_bounds = array<i64: 1, 128>}, {transform_indices = @transform_4, window_bounds = array<i64: 128, 128>}]} {
    %c0 = arith.constant 0 : index
    %c0_0 = arith.constant 0 : index
    %0 = vector.load %arg1[%c0, %c0_0] : memref<128x16xbf16, #tpu.memory_space<vmem>>, vector<128x16xbf16>
    %c0_1 = arith.constant 0 : index
    %c0_2 = arith.constant 0 : index
    %1 = vector.load %arg2[%c0_1, %c0_2] : memref<16x128xbf16, #tpu.memory_space<vmem>>, vector<16x128xbf16>
    %cst = arith.constant dense<0.000000e+00> : vector<128x128xf32>
    %2 = tpu.matmul %0, %1, %cst {dimension_numbers = #tpu.dot_dimension_numbers<[1], [0], [0], [1], [0, 0, 1, 1], [], []>} : vector<128x16xbf16>, vector<16x128xbf16>, vector<128x128xf32> -> vector<128x128xf32>
    %c0_3 = arith.constant 0 : index
    %c0_4 = arith.constant 0 : index
    %3 = vector.load %arg3[%c0_3, %c0_4] : memref<1x128xf32, #tpu.memory_space<vmem>>, vector<1x128xf32>
    %4 = vector.broadcast %3 : vector<1x128xf32> to vector<128x128xf32>
    %5 = arith.mulf %2, %4 : vector<128x128xf32>
    %c0_5 = arith.constant 0 : index
    %c0_6 = arith.constant 0 : index
    %6 = vector.load %arg4[%c0_5, %c0_6] : memref<1x128xf32, #tpu.memory_space<vmem>>, vector<1x128xf32>
    %7 = vector.broadcast %6 : vector<1x128xf32> to vector<128x128xf32>
    %8 = arith.addf %5, %7 : vector<128x128xf32>
    %c0_7 = arith.constant 0 : index
    %c0_8 = arith.constant 0 : index
    %9 = vector.load %arg5[%c0_7, %c0_8] : memref<128x128xf32, #tpu.memory_space<vmem>>, vector<128x128xf32>
    tpu.vector_store %arg5[%c0_7, %c0_8], %8 {strides = array<i32>} : memref<128x128xf32, #tpu.memory_space<vmem>>, vector<128x128xf32>,
    return
  }
  func.func @transform_0(%arg0: i32) -> (i32, i32) {
    %c0_i32 = arith.constant 0 : i32
    %c0_i32_0 = arith.constant 0 : i32
    return %arg0, %c0_i32 : i32, i32
  }
  func.func @transform_1(%arg0: i32) -> (i32, i32) {
    %c0_i32 = arith.constant 0 : i32
    %c0_i32_0 = arith.constant 0 : i32
    %c0_i32_1 = arith.constant 0 : i32
    return %c0_i32, %c0_i32_0 : i32, i32
  }
  func.func @transform_2(%arg0: i32) -> (i32, i32) {
    %c0_i32 = arith.constant 0 : i32
    %c0_i32_0 = arith.constant 0 : i32
    %c0_i32_1 = arith.constant 0 : i32
    return %c0_i32, %c0_i32_0 : i32, i32
  }
  func.func @transform_3(%arg0: i32) -> (i32, i32) {
    %c0_i32 = arith.constant 0 : i32
    %c0_i32_0 = arith.constant 0 : i32
    %c0_i32_1 = arith.constant 0 : i32
    return %c0_i32, %c0_i32_0 : i32, i32
  }
  func.func @transform_4(%arg0: i32) -> (i32, i32) {
    %c0_i32 = arith.constant 0 : i32
    %c0_i32_0 = arith.constant 0 : i32
    return %arg0, %c0_i32 : i32, i32
  }
}

module attributes {stable_mosaic.version = 11 : i64} {
  func.func @_gemm_bn_kernel(%arg0: i32, %arg1: memref<128x16xbf16, #tpu.memory_space<vmem>>, %arg2: memref<16x128xbf16, #tpu.memory_space<vmem>>, %arg3: memref<1x128xf32, #tpu.memory_space<vmem>>, %arg4: memref<1x128xf32, #tpu.memory_space<vmem>>, %arg5: memref<128x128xf32, #tpu.memory_space<vmem>>) attributes {dimension_semantics = [#tpu.dimension_semantics<parallel>], iteration_bounds = array<i64: 1>, scalar_prefetch = 0 : i64, scratch_operands = 0 : i64, tpu.core_type = #tpu.core_type<tc>, window_params = [{transform_indices = @transform_0, window_bounds = array<i64: 128, 16>}, {pipeline_mode = #tpu.pipeline_mode<synchronous>, transform_indices = @transform_1, window_bounds = array<i64: 16, 128>}, {pipeline_mode = #tpu.pipeline_mode<synchronous>, transform_indices = @transform_2, window_bounds = array<i64: 1, 128>}, {pipeline_mode = #tpu.pipeline_mode<synchronous>, transform_indices = @transform_3, window_bounds = array<i64: 1, 128>}, {transform_indices = @transform_4, window_bounds = array<i64: 128, 128>}]} {
    %c0 = arith.constant 0 : index
    %c0_0 = arith.constant 0 : index
    %0 = vector.load %arg1[%c0, %c0_0] : memref<128x16xbf16, #tpu.memory_space<vmem>>, vector<128x16xbf16>
    %c0_1 = arith.constant 0 : index
    %c0_2 = arith.constant 0 : index
    %1 = vector.load %arg2[%c0_1, %c0_2] : memref<16x128xbf16, #tpu.memory_space<vmem>>, vector<16x128xbf16>
    %cst = arith.constant dense<0.000000e+00> : vector<128x128xf32>
    %2 = tpu.matmul %0, %1, %cst {dimension_numbers = #tpu.dot_dimension_numbers<[1], [0], [0], [1], [0, 0, 1, 1], [], []>} : vector<128x16xbf16>, vector<16x128xbf16>, vector<128x128xf32> -> vector<128x128xf32>
    %c0_3 = arith.constant 0 : index
    %c0_4 = arith.constant 0 : index
    %3 = vector.load %arg3[%c0_3, %c0_4] : memref<1x128xf32, #tpu.memory_space<vmem>>, vector<1x128xf32>
    %4 = vector.broadcast %3 : vector<1x128xf32> to vector<128x128xf32>
    %5 = arith.mulf %2, %4 : vector<128x128xf32>
    %c0_5 = arith.constant 0 : index
    %c0_6 = arith.constant 0 : index
    %6 = vector.load %arg4[%c0_5, %c0_6] : memref<1x128xf32, #tpu.memory_space<vmem>>, vector<1x128xf32>
    %7 = vector.broadcast %6 : vector<1x128xf32> to vector<128x128xf32>
    %8 = arith.addf %5, %7 : vector<128x128xf32>
    %c0_7 = arith.constant 0 : index
    %c0_8 = arith.constant 0 : index
    %9 = vector.load %arg5[%c0_7, %c0_8] : memref<128x128xf32, #tpu.memory_space<vmem>>, vector<128x128xf32>
    tpu.vector_store %arg5[%c0_7, %c0_8], %8 {strides = array<i32>} : memref<128x128xf32, #tpu.memory_space<vmem>>, vector<128x128xf32>,
    return
  }
  func.func @transform_0(%arg0: i32) -> (i32, i32) {
    %c0_i32 = arith.constant 0 : i32
    %c0_i32_0 = arith.constant 0 : i32
    return %arg0, %c0_i32 : i32, i32
  }
  func.func @transform_1(%arg0: i32) -> (i32, i32) {
    %c0_i32 = arith.constant 0 : i32
    %c0_i32_0 = arith.constant 0 : i32
    %c0_i32_1 = arith.constant 0 : i32
    return %c0_i32, %c0_i32_0 : i32, i32
  }
  func.func @transform_2(%arg0: i32) -> (i32, i32) {
    %c0_i32 = arith.constant 0 : i32
    %c0_i32_0 = arith.constant 0 : i32
    %c0_i32_1 = arith.constant 0 : i32
    return %c0_i32, %c0_i32_0 : i32, i32
  }
  func.func @transform_3(%arg0: i32) -> (i32, i32) {
    %c0_i32 = arith.constant 0 : i32
    %c0_i32_0 = arith.constant 0 : i32
    %c0_i32_1 = arith.constant 0 : i32
    return %c0_i32, %c0_i32_0 : i32, i32
  }
  func.func @transform_4(%arg0: i32) -> (i32, i32) {
    %c0_i32 = arith.constant 0 : i32
    %c0_i32_0 = arith.constant 0 : i32
    return %arg0, %c0_i32 : i32, i32
  }
}

</mosaic_0001>

<bundles_post_ra>
// kernel: tpu_custom_call.1
= control target key start
LH: loop header
LB: loop body
LE: loop exit
PB: predicated region body
PF: predicated region fallthrough
CT: control target
= control target key end

     0   :  { %vm83_vm0 = vcmask 130048   ;;  %s448_s0 = inlined_call_operand.vmem [shape: bf16[128,16], index: 0, kind: input, shape index: {}]   ;;  %s449_s1 = inlined_call_operand.vmem [shape: bf16[16,128], index: 1, kind: input, shape index: {}]   ;;  %s450_s2 = inlined_call_operand.vmem [shape: f32[1,128], index: 2, kind: input, shape index: {}]   ;;  %s451_s3 = inlined_call_operand.vmem [shape: f32[1,128], index: 3, kind: input, shape index: {}]   ;;  %s452_s4 = inlined_call_operand.hbm [shape: f32[128,128], index: 4, kind: output, shape index: {}]  }
   0x1   :  { %v334_v0 = vld [vmem:[%s449_s1] sm:$0xff]   ;;  %v337_v3 = vld [vmem:[%s448_s0 + $0x8] sm:$0xff]   ;;  %v339_v5 = vld [vmem:[%s448_s0 + $0x10] sm:$0xff]  }
   0x2   :  { %v335_v1 = vld [vmem:[%s448_s0] sm:$0xff]   ;;  %311 = vmatprep.subr.bf16.mxu0 %v334_v0  ;;  %329 = vmatprep.subr.bf16.mxu1 %v334_v0  ;;  %v338_v4 = vld [vmem:[%s448_s0 + $0x28] sm:$0xff]   ;;  %v340_v6 = vld [vmem:[%s448_s0 + $0x30] sm:$0xff]  }
   0x3   :  { %v336_v2 = vld [vmem:[%s448_s0 + $0x20] sm:$0xff]   ;;  %312 = vmatpush3.bf16.msra.mxu0 %v334_v0  ;;  %330 = vmatpush3.bf16.msra.mxu1 %v334_v0 }
   0x4   :  { %313 = vmatprep.mubr.msk.bf16.mxu0 %vm83_vm0, %v335_v1  ;;  %321 = vmatprep.mubr.msk.bf16.mxu1 %vm83_vm0, %v336_v2 }
   0x6   :  { %314 = vmatmul.mubr.msk.bf16.vlgmr.msra.gmra.mrb[0].mxu0 %vm83_vm0, %v337_v3  ;;  %322 = vmatmul.mubr.msk.bf16.vlgmr.msra.gmra.mrb[0].mxu1 %vm83_vm0, %v338_v4 }
   0x7   :  { %317 = vmatprep.mubr.msk.bf16.mxu0 %vm83_vm0, %v339_v5  ;;  %325 = vmatprep.mubr.msk.bf16.mxu1 %vm83_vm0, %v340_v6 }
   0x8   :  { %9 = vsyncpa [#allocation3], 0  ;;  %v341_v7 = vld [vmem:[%s448_s0 + $0x18] sm:$0xff]   ;;  %v300_v9 = vld [vmem:[%s450_s2] ss:$0 sm:$0xff] }
   0x9   :  { %v342_v8 = vld [vmem:[%s448_s0 + $0x38] sm:$0xff]   ;;  %v301_v11 = vld [vmem:[%s451_s3] ss:$0 sm:$0xff]  ;;  %s367_s0 = smov [#allocation2]  }
   0xa   :  { %s272_s2 = sshll.u32 %s367_s0, 4  ;;  %s273_s2 = int_to_ptr.vmem [resolvable:$true] %s272_s2 }
   0xb   :  { %s343_s3 = scalar_lea.vmem %s273_s2, 2048  ;;  %p348_p1 = scmp.lt.s32.totalorder %s273_s2, %s273_s2 }
   0xc   :  { %p344_p0 = scmp.ne.s32.totalorder %s273_s2, %s343_s3  ;;  %p349_p2 = scmp.lt.s32.totalorder %s343_s3, %s343_s3 }
   0xe   :  { %318 = vmatmul.mubr.msk.bf16.gmra.mrb[4].mxu0 %vm83_vm0, %v341_v7  ;;  %326 = vmatmul.mubr.msk.bf16.gmra.mrb[4].mxu1 %vm83_vm0, %v342_v8  ;;  %p350_p3 = por %p349_p2, %p348_p1 }
  0x10   :  { %p351_p4 = pnand %p350_p3, %p344_p0 }
  0xd9   :  { %v315_v10 = vpop.f32.mrb[0].mxu0  ;;  %v323_v12 = vpop.f32.mrb[0].mxu1 }
  0xda   :  { %v214_v13 = vmul.f32 %v315_v10, %v300_v9  ;;  %v222_v14 = vmul.f32 %v323_v12, %v300_v9  ;;  %v142_v15 = vpop.f32.mrb[1].mxu0  ;;  %v174_v16 = vpop.f32.mrb[1].mxu1 }
  0xdb   :  { %v212_v17 = vmul.f32 %v300_v9, %v142_v15  ;;  %v220_v18 = vmul.f32 %v300_v9, %v174_v16  ;;  %v316_v19 = vpop.f32.mrb[2].mxu0  ;;  %v324_v20 = vpop.f32.mrb[2].mxu1 }
  0xdc   :  { %v237_v21 = vadd.f32 %v301_v11, %v214_v13  ;;  %v245_v22 = vadd.f32 %v301_v11, %v222_v14  ;;  %v215_v23 = vmul.f32 %v316_v19, %v300_v9  ;;  %v223_v24 = vmul.f32 %v324_v20, %v300_v9  ;;  %v145_v25 = vpop.f32.mrb[3].mxu0  ;;  %v177_v26 = vpop.f32.mrb[3].mxu1 }
  0xdd   :  { %v235_v27 = vadd.f32 %v301_v11, %v212_v17  ;;  %v243_v28 = vadd.f32 %v301_v11, %v220_v18  ;;  %v213_v29 = vmul.f32 %v300_v9, %v145_v25  ;;  %v221_v30 = vmul.f32 %v300_v9, %v177_v26 }
  0xde   :  { %253 = vst [vmem:[#allocation2 + $0x10] sm:$0xff] %v237_v21  ;;  %261 = vst [vmem:[#allocation2 + $0x50] sm:$0xff] %v245_v22  ;;  %v238_v31 = vadd.f32 %v301_v11, %v215_v23  ;;  %v246_v32 = vadd.f32 %v301_v11, %v223_v24 }
  0xdf   :  { %251 = vst [vmem:[#allocation2] sm:$0xff] %v235_v27  ;;  %259 = vst [vmem:[#allocation2 + $0x40] sm:$0xff] %v243_v28  ;;  %v236_v33 = vadd.f32 %v301_v11, %v213_v29  ;;  %v244_v34 = vadd.f32 %v301_v11, %v221_v30 }
  0xe0   :  { %254 = vst [vmem:[#allocation2 + $0x18] sm:$0xff] %v238_v31  ;;  %262 = vst [vmem:[#allocation2 + $0x58] sm:$0xff] %v246_v32 }
  0xe1   :  { %252 = vst [vmem:[#allocation2 + $0x8] sm:$0xff] %v236_v33  ;;  %260 = vst [vmem:[#allocation2 + $0x48] sm:$0xff] %v244_v34  ;;  %v319_v35 = vpop.f32.mrb[4].mxu0  ;;  %v327_v36 = vpop.f32.mrb[4].mxu1 }
  0xe2   :  { %v218_v37 = vmul.f32 %v319_v35, %v300_v9  ;;  %v226_v38 = vmul.f32 %v327_v36, %v300_v9  ;;  %v158_v39 = vpop.f32.mrb[5].mxu0  ;;  %v190_v40 = vpop.f32.mrb[5].mxu1 }
  0xe3   :  { %v216_v41 = vmul.f32 %v300_v9, %v158_v39  ;;  %v224_v42 = vmul.f32 %v300_v9, %v190_v40  ;;  %v320_v43 = vpop.f32.mrb[6].mxu0  ;;  %v328_v44 = vpop.f32.mrb[6].mxu1 }
  0xe4   :  { %v241_v45 = vadd.f32 %v301_v11, %v218_v37  ;;  %v249_v46 = vadd.f32 %v301_v11, %v226_v38  ;;  %v219_v47 = vmul.f32 %v320_v43, %v300_v9  ;;  %v227_v48 = vmul.f32 %v328_v44, %v300_v9  ;;  %v161_v49 = vpop.f32.mrb[7].mxu0  ;;  %v193_v50 = vpop.f32.mrb[7].mxu1 }
  0xe5   :  { %v239_v51 = vadd.f32 %v301_v11, %v216_v41  ;;  %v247_v52 = vadd.f32 %v301_v11, %v224_v42  ;;  %v217_v53 = vmul.f32 %v300_v9, %v161_v49  ;;  %v225_v54 = vmul.f32 %v300_v9, %v193_v50 }
  0xe6   :  { %257 = vst [vmem:[#allocation2 + $0x30] sm:$0xff] %v241_v45  ;;  %265 = vst [vmem:[#allocation2 + $0x70] sm:$0xff] %v249_v46  ;;  %v242_v55 = vadd.f32 %v301_v11, %v219_v47  ;;  %v250_v56 = vadd.f32 %v301_v11, %v227_v48 }
  0xe7   :  { %255 = vst [vmem:[#allocation2 + $0x20] sm:$0xff] %v239_v51  ;;  %263 = vst [vmem:[#allocation2 + $0x60] sm:$0xff] %v247_v52  ;;  %v240_v57 = vadd.f32 %v301_v11, %v217_v53  ;;  %v248_v58 = vadd.f32 %v301_v11, %v225_v54 }
  0xe8   :  { %258 = vst [vmem:[#allocation2 + $0x38] sm:$0xff] %v242_v55  ;;  %266 = vst [vmem:[#allocation2 + $0x78] sm:$0xff] %v250_v56 }
  0xe9   :  { %256 = vst [vmem:[#allocation2 + $0x28] sm:$0xff] %v240_v57  ;;  %264 = vst [vmem:[#allocation2 + $0x68] sm:$0xff] %v248_v58 }
  0xea   :  { %354 = shalt.err (!%p351_p4)
}
  0xeb   :  { %s355_s12 = scalar_lea.hbm %s452_s4, 2048 }
  0xec   :  { %p356_p5 = scmp.ne.s32.totalorder %s452_s4, %s355_s12  ;;  %p359_p6 = scmp.lt.u32.totalorder %s355_s12, %s452_s4 }
  0xee   :  { %p361_p7 = pnand %p359_p6, %p356_p5 }
  0xf0   :  { %364 = shalt.err (!%p361_p7)
}
  0xf1   :  { %s368_s17 = smov 128   ;;  %s369_s18 = smov 8  }
  0xf2   :  { %278 = dma.vmem_to_hbm [thread:$0]  %s273_s2, 2048, %s452_s4, [#allocation3], %s368_s17, %s368_s17, %s369_s18  }
  0xf3   :  { %365 = dma.done.wait [#allocation3], 2048  }
  0xf4   :  { %366 = vsyncadd [#allocation3], 4294965248 }
  0xf5   :  { %282 = vsyncpa [#allocation3], 1 }

// kernel: tpu_custom_call.1
= control target key start
LH: loop header
LB: loop body
LE: loop exit
PB: predicated region body
PF: predicated region fallthrough
CT: control target
= control target key end

     0   :  { %vm83_vm0 = vcmask 130048   ;;  %s448_s0 = inlined_call_operand.vmem [shape: bf16[128,16], index: 0, kind: input, shape index: {}]   ;;  %s449_s1 = inlined_call_operand.vmem [shape: bf16[16,128], index: 1, kind: input, shape index: {}]   ;;  %s450_s2 = inlined_call_operand.vmem [shape: f32[1,128], index: 2, kind: input, shape index: {}]   ;;  %s451_s3 = inlined_call_operand.vmem [shape: f32[1,128], index: 3, kind: input, shape index: {}]   ;;  %s452_s4 = inlined_call_operand.hbm [shape: f32[128,128], index: 4, kind: output, shape index: {}]  }
   0x1   :  { %v334_v0 = vld [vmem:[%s449_s1] sm:$0xff]   ;;  %v337_v3 = vld [vmem:[%s448_s0 + $0x8] sm:$0xff]   ;;  %v339_v5 = vld [vmem:[%s448_s0 + $0x10] sm:$0xff]  }
   0x2   :  { %v335_v1 = vld [vmem:[%s448_s0] sm:$0xff]   ;;  %311 = vmatprep.subr.bf16.mxu0 %v334_v0  ;;  %329 = vmatprep.subr.bf16.mxu1 %v334_v0  ;;  %v338_v4 = vld [vmem:[%s448_s0 + $0x28] sm:$0xff]   ;;  %v340_v6 = vld [vmem:[%s448_s0 + $0x30] sm:$0xff]  }
   0x3   :  { %v336_v2 = vld [vmem:[%s448_s0 + $0x20] sm:$0xff]   ;;  %312 = vmatpush3.bf16.msra.mxu0 %v334_v0  ;;  %330 = vmatpush3.bf16.msra.mxu1 %v334_v0 }
   0x4   :  { %313 = vmatprep.mubr.msk.bf16.mxu0 %vm83_vm0, %v335_v1  ;;  %321 = vmatprep.mubr.msk.bf16.mxu1 %vm83_vm0, %v336_v2 }
   0x6   :  { %314 = vmatmul.mubr.msk.bf16.vlgmr.msra.gmra.mrb[0].mxu0 %vm83_vm0, %v337_v3  ;;  %322 = vmatmul.mubr.msk.bf16.vlgmr.msra.gmra.mrb[0].mxu1 %vm83_vm0, %v338_v4 }
   0x7   :  { %317 = vmatprep.mubr.msk.bf16.mxu0 %vm83_vm0, %v339_v5  ;;  %325 = vmatprep.mubr.msk.bf16.mxu1 %vm83_vm0, %v340_v6 }
   0x8   :  { %9 = vsyncpa [#allocation3], 0  ;;  %v341_v7 = vld [vmem:[%s448_s0 + $0x18] sm:$0xff]   ;;  %v300_v9 = vld [vmem:[%s450_s2] ss:$0 sm:$0xff] }
   0x9   :  { %v342_v8 = vld [vmem:[%s448_s0 + $0x38] sm:$0xff]   ;;  %v301_v11 = vld [vmem:[%s451_s3] ss:$0 sm:$0xff]  ;;  %s367_s0 = smov [#allocation2]  }
   0xa   :  { %s272_s2 = sshll.u32 %s367_s0, 4  ;;  %s273_s2 = int_to_ptr.vmem [resolvable:$true] %s272_s2 }
   0xb   :  { %s343_s3 = scalar_lea.vmem %s273_s2, 2048  ;;  %p348_p1 = scmp.lt.s32.totalorder %s273_s2, %s273_s2 }
   0xc   :  { %p344_p0 = scmp.ne.s32.totalorder %s273_s2, %s343_s3  ;;  %p349_p2 = scmp.lt.s32.totalorder %s343_s3, %s343_s3 }
   0xe   :  { %318 = vmatmul.mubr.msk.bf16.gmra.mrb[4].mxu0 %vm83_vm0, %v341_v7  ;;  %326 = vmatmul.mubr.msk.bf16.gmra.mrb[4].mxu1 %vm83_vm0, %v342_v8  ;;  %p350_p3 = por %p349_p2, %p348_p1 }
  0x10   :  { %p351_p4 = pnand %p350_p3, %p344_p0 }
  0xd9   :  { %v315_v10 = vpop.f32.mrb[0].mxu0  ;;  %v323_v12 = vpop.f32.mrb[0].mxu1 }
  0xda   :  { %v214_v13 = vmul.f32 %v315_v10, %v300_v9  ;;  %v222_v14 = vmul.f32 %v323_v12, %v300_v9  ;;  %v142_v15 = vpop.f32.mrb[1].mxu0  ;;  %v174_v16 = vpop.f32.mrb[1].mxu1 }
  0xdb   :  { %v212_v17 = vmul.f32 %v300_v9, %v142_v15  ;;  %v220_v18 = vmul.f32 %v300_v9, %v174_v16  ;;  %v316_v19 = vpop.f32.mrb[2].mxu0  ;;  %v324_v20 = vpop.f32.mrb[2].mxu1 }
  0xdc   :  { %v237_v21 = vadd.f32 %v301_v11, %v214_v13  ;;  %v245_v22 = vadd.f32 %v301_v11, %v222_v14  ;;  %v215_v23 = vmul.f32 %v316_v19, %v300_v9  ;;  %v223_v24 = vmul.f32 %v324_v20, %v300_v9  ;;  %v145_v25 = vpop.f32.mrb[3].mxu0  ;;  %v177_v26 = vpop.f32.mrb[3].mxu1 }
  0xdd   :  { %v235_v27 = vadd.f32 %v301_v11, %v212_v17  ;;  %v243_v28 = vadd.f32 %v301_v11, %v220_v18  ;;  %v213_v29 = vmul.f32 %v300_v9, %v145_v25  ;;  %v221_v30 = vmul.f32 %v300_v9, %v177_v26 }
  0xde   :  { %253 = vst [vmem:[#allocation2 + $0x10] sm:$0xff] %v237_v21  ;;  %261 = vst [vmem:[#allocation2 + $0x50] sm:$0xff] %v245_v22  ;;  %v238_v31 = vadd.f32 %v301_v11, %v215_v23  ;;  %v246_v32 = vadd.f32 %v301_v11, %v223_v24 }
  0xdf   :  { %251 = vst [vmem:[#allocation2] sm:$0xff] %v235_v27  ;;  %259 = vst [vmem:[#allocation2 + $0x40] sm:$0xff] %v243_v28  ;;  %v236_v33 = vadd.f32 %v301_v11, %v213_v29  ;;  %v244_v34 = vadd.f32 %v301_v11, %v221_v30 }
  0xe0   :  { %254 = vst [vmem:[#allocation2 + $0x18] sm:$0xff] %v238_v31  ;;  %262 = vst [vmem:[#allocation2 + $0x58] sm:$0xff] %v246_v32 }
  0xe1   :  { %252 = vst [vmem:[#allocation2 + $0x8] sm:$0xff] %v236_v33  ;;  %260 = vst [vmem:[#allocation2 + $0x48] sm:$0xff] %v244_v34  ;;  %v319_v35 = vpop.f32.mrb[4].mxu0  ;;  %v327_v36 = vpop.f32.mrb[4].mxu1 }
  0xe2   :  { %v218_v37 = vmul.f32 %v319_v35, %v300_v9  ;;  %v226_v38 = vmul.f32 %v327_v36, %v300_v9  ;;  %v158_v39 = vpop.f32.mrb[5].mxu0  ;;  %v190_v40 = vpop.f32.mrb[5].mxu1 }
  0xe3   :  { %v216_v41 = vmul.f32 %v300_v9, %v158_v39  ;;  %v224_v42 = vmul.f32 %v300_v9, %v190_v40  ;;  %v320_v43 = vpop.f32.mrb[6].mxu0  ;;  %v328_v44 = vpop.f32.mrb[6].mxu1 }
  0xe4   :  { %v241_v45 = vadd.f32 %v301_v11, %v218_v37  ;;  %v249_v46 = vadd.f32 %v301_v11, %v226_v38  ;;  %v219_v47 = vmul.f32 %v320_v43, %v300_v9  ;;  %v227_v48 = vmul.f32 %v328_v44, %v300_v9  ;;  %v161_v49 = vpop.f32.mrb[7].mxu0  ;;  %v193_v50 = vpop.f32.mrb[7].mxu1 }
  0xe5   :  { %v239_v51 = vadd.f32 %v301_v11, %v216_v41  ;;  %v247_v52 = vadd.f32 %v301_v11, %v224_v42  ;;  %v217_v53 = vmul.f32 %v300_v9, %v161_v49  ;;  %v225_v54 = vmul.f32 %v300_v9, %v193_v50 }
  0xe6   :  { %257 = vst [vmem:[#allocation2 + $0x30] sm:$0xff] %v241_v45  ;;  %265 = vst [vmem:[#allocation2 + $0x70] sm:$0xff] %v249_v46  ;;  %v242_v55 = vadd.f32 %v301_v11, %v219_v47  ;;  %v250_v56 = vadd.f32 %v301_v11, %v227_v48 }
  0xe7   :  { %255 = vst [vmem:[#allocation2 + $0x20] sm:$0xff] %v239_v51  ;;  %263 = vst [vmem:[#allocation2 + $0x60] sm:$0xff] %v247_v52  ;;  %v240_v57 = vadd.f32 %v301_v11, %v217_v53  ;;  %v248_v58 = vadd.f32 %v301_v11, %v225_v54 }
  0xe8   :  { %258 = vst [vmem:[#allocation2 + $0x38] sm:$0xff] %v242_v55  ;;  %266 = vst [vmem:[#allocation2 + $0x78] sm:$0xff] %v250_v56 }
  0xe9   :  { %256 = vst [vmem:[#allocation2 + $0x28] sm:$0xff] %v240_v57  ;;  %264 = vst [vmem:[#allocation2 + $0x68] sm:$0xff] %v248_v58 }
  0xea   :  { %354 = shalt.err (!%p351_p4)
}
  0xeb   :  { %s355_s12 = scalar_lea.hbm %s452_s4, 2048 }
  0xec   :  { %p356_p5 = scmp.ne.s32.totalorder %s452_s4, %s355_s12  ;;  %p359_p6 = scmp.lt.u32.totalorder %s355_s12, %s452_s4 }
  0xee   :  { %p361_p7 = pnand %p359_p6, %p356_p5 }
  0xf0   :  { %364 = shalt.err (!%p361_p7)
}
  0xf1   :  { %s368_s17 = smov 128   ;;  %s369_s18 = smov 8  }
  0xf2   :  { %278 = dma.vmem_to_hbm [thread:$0]  %s273_s2, 2048, %s452_s4, [#allocation3], %s368_s17, %s368_s17, %s369_s18  }
  0xf3   :  { %365 = dma.done.wait [#allocation3], 2048  }
  0xf4   :  { %366 = vsyncadd [#allocation3], 4294965248 }
  0xf5   :  { %282 = vsyncpa [#allocation3], 1 }

</bundles_post_ra>
